<compile_context>
chip_gen: v6e
topology: v6e:2x2x1
jax: 0.10.0
libtpu: 0.0.40
codegen_flags: <defaults>
</compile_context>

<pallas_src>
import functools

import jax
import jax.numpy as jnp
from jax.experimental import pallas as pl
from jax.experimental.pallas import tpu as pltpu


def _round_up(n: int, m: int) -> int:
    return ((n + m - 1) // m) * m


_VMEM_LIMIT_BYTES = 32 * 1024 * 1024      # raise v5e's 16 MiB scoped default
_RESIDENT_BUDGET_BYTES = 20 * 1024 * 1024  # conservative working-set budget


# --------------------------------------------------------------------------- #
# Path A: weight-resident.  Whole (F, C) weight in VMEM, grid over M only.
# --------------------------------------------------------------------------- #
def _resident_kernel(x_ref, w_ref, b_ref, o_ref):
    # x_ref: (tm, F) f32 (cast to bf16 here; x is read exactly once),
    # w_ref: (F, C) bf16 pre-transposed weight, b_ref: (1, C) f32,
    # o_ref: (tm, C) f32.
    xc = x_ref[...].astype(w_ref.dtype)
    o_ref[...] = (
        jnp.dot(xc, w_ref[...], preferred_element_type=jnp.float32) + b_ref[...]
    ).astype(o_ref.dtype)


# --------------------------------------------------------------------------- #
# Path B: general (M, N, K) tiled GEMM, f32 output doubles as the accumulator.
# K must stay the innermost ("arbitrary") grid axis: the output block is only
# valid because its index is constant across k and it stays VMEM-resident.
# --------------------------------------------------------------------------- #
def _tiled_kernel(x_ref, w_ref, b_ref, o_ref):
    # x_ref: (tm, tk) bf16, w_ref: (tk, tn) bf16, b_ref: (1, tn) f32,
    # o_ref: (tm, tn) f32.
    k = pl.program_id(2)

    @pl.when(k == 0)
    def _init():
        o_ref[...] = jnp.broadcast_to(b_ref[...], o_ref.shape).astype(o_ref.dtype)

    o_ref[...] += jnp.dot(x_ref[...], w_ref[...],
                          preferred_element_type=jnp.float32)


@functools.partial(
    jax.jit, static_argnames=("tm", "tn", "tk", "compute_dtype", "force_path"))
def linear_probing_forward(x, weight, bias, *, tm=256, tn=512, tk=1024,
                           compute_dtype=jnp.bfloat16, force_path="auto"):
    """y = x @ weight.T + bias   (torch.nn.Linear forward semantics)

    x:      (B, F)  float32
    weight: (C, F)  float32   (PyTorch Linear weight layout, NOT transposed)
    bias:   (C,)    float32
    returns (B, C)  x.dtype
    """
    B, F = x.shape
    C, F2 = weight.shape
    assert F == F2 and bias.shape == (C,)
    out_dtype = x.dtype

    cbytes = jnp.dtype(compute_dtype).itemsize
    b2 = bias.astype(jnp.float32).reshape(1, C)

    # ---------------- Path A: weight-resident ----------------
    tm_a = B if B <= 512 else 256
    resident_bytes = (
        2 * F * C * cbytes        # resident weight (x2 buffering safety margin)
        + 2 * tm_a * F * 4        # f32 activation tile, double-buffered
        + 2 * tm_a * C * 4        # f32 output tile, double-buffered
        + 128 * max(C, 128) * 4   # bias (padded layout)
    )
    use_resident = (force_path == "resident") or (
        force_path == "auto" and resident_bytes <= _RESIDENT_BUDGET_BYTES)

    if use_resident:
        wt = weight.T.astype(compute_dtype)          # (F, C): cast+transpose once
        Bp = B if B <= tm_a else _round_up(B, tm_a)
        xp = x if Bp == B else jnp.pad(x, ((0, Bp - B), (0, 0)))
        grid = (Bp // tm_a,)

        out = pl.pallas_call(
            _resident_kernel,
            out_shape=jax.ShapeDtypeStruct((Bp, C), jnp.float32),
            grid_spec=pltpu.PrefetchScalarGridSpec(
                num_scalar_prefetch=0,
                grid=grid,
                in_specs=[
                    pl.BlockSpec((tm_a, F), lambda i: (i, 0)),   # x tile (f32)
                    pl.BlockSpec((F, C), lambda i: (0, 0)),      # resident weight
                    pl.BlockSpec((1, C), lambda i: (0, 0)),      # bias
                ],
                out_specs=pl.BlockSpec((tm_a, C), lambda i: (i, 0)),
            ),
            compiler_params=pltpu.CompilerParams(
                dimension_semantics=("parallel",),
                vmem_limit_bytes=_VMEM_LIMIT_BYTES,
            ),
        )(xp, wt, b2)
        if Bp != B:
            out = out[:B]
        return out.astype(out_dtype)

    # ---------------- Path B: general tiled GEMM ----------------
    # 256-aligned M/N fill the 256x256 MXU on v6e/v7x; tm rounded to 16 for
    # bf16 sublane packing.  Tiles shrink for small problems.
    tm = min(tm, _round_up(B, 16))
    tn = min(tn, _round_up(C, 128))
    tk = min(tk, _round_up(F, 128))
    Bp, Cp, Fp = _round_up(B, tm), _round_up(C, tn), _round_up(F, tk)

    xc = x.astype(compute_dtype)
    wt = weight.T.astype(compute_dtype)              # (F, C): MXU-friendly (K, N)
    if (Bp, Fp) != (B, F):
        xc = jnp.pad(xc, ((0, Bp - B), (0, Fp - F)))
    if (Fp, Cp) != (F, C):
        wt = jnp.pad(wt, ((0, Fp - F), (0, Cp - C)))
    if Cp != C:
        b2 = jnp.pad(b2, ((0, 0), (0, Cp - C)))

    grid = (Bp // tm, Cp // tn, Fp // tk)

    out = pl.pallas_call(
        _tiled_kernel,
        out_shape=jax.ShapeDtypeStruct((Bp, Cp), jnp.float32),
        grid_spec=pltpu.PrefetchScalarGridSpec(
            num_scalar_prefetch=0,
            grid=grid,
            in_specs=[
                pl.BlockSpec((tm, tk), lambda i, j, k: (i, k)),   # x tile
                pl.BlockSpec((tk, tn), lambda i, j, k: (k, j)),   # W^T tile (K, N)
                pl.BlockSpec((1, tn), lambda i, j, k: (0, j)),    # bias tile
            ],
            out_specs=pl.BlockSpec((tm, tn), lambda i, j, k: (i, j)),
        ),
        compiler_params=pltpu.CompilerParams(
            dimension_semantics=("parallel", "parallel", "arbitrary"),
            vmem_limit_bytes=_VMEM_LIMIT_BYTES,
        ),
    )(xc, wt, b2)

    if (Bp, Cp) != (B, C):
        out = out[:B, :C]
    return out.astype(out_dtype)


if __name__ == "__main__":
    # Small shapes consistent with LinearProbing(feature_dim, num_classes).
    batch, feature_dim, num_classes = 8, 32, 16

    key = jax.random.PRNGKey(0)
    kx, kw, kb = jax.random.split(key, 3)

    x = jax.random.normal(kx, (batch, feature_dim), dtype=jnp.float32)
    # PyTorch Linear init is U(-1/sqrt(F), 1/sqrt(F)); same bound here.
    bound = 1.0 / (feature_dim ** 0.5)
    weight = jax.random.uniform(kw, (num_classes, feature_dim),
                                minval=-bound, maxval=bound, dtype=jnp.float32)
    bias = jax.random.uniform(kb, (num_classes,),
                              minval=-bound, maxval=bound, dtype=jnp.float32)

    # References.
    xb = x.astype(jnp.bfloat16).astype(jnp.float32)
    wb = weight.astype(jnp.bfloat16).astype(jnp.float32)
    y_ref_bf16 = xb @ wb.T + bias          # same bf16-in / f32-acc semantics
    y_ref_f32 = x @ weight.T + bias        # full-f32 torch.nn.Linear math

    # Path A (weight-resident) -- what real linear-probing shapes hit.
    y = jax.block_until_ready(linear_probing_forward(x, weight, bias))
    assert y.shape == (batch, num_classes)
    assert y.dtype == jnp.float32
    assert jnp.allclose(y, y_ref_bf16, atol=1e-3, rtol=1e-3)
    assert jnp.allclose(y, y_ref_f32, atol=3e-2, rtol=3e-2)

    # Path B (general tiled GEMM) -- exercised explicitly for coverage.
    y_t = jax.block_until_ready(
        linear_probing_forward(x, weight, bias, force_path="tiled"))
    assert y_t.shape == (batch, num_classes)
    assert jnp.allclose(y_t, y_ref_bf16, atol=1e-3, rtol=1e-3)
    assert jnp.allclose(y_t, y_ref_f32, atol=3e-2, rtol=3e-2)

    print("KERNEL_OK")
</pallas_src>

<mosaic_0001>
module attributes {stable_mosaic.version = 11 : i64} {
  func.func @_resident_kernel(%arg0: i32, %arg1: memref<8x32xf32, #tpu.memory_space<vmem>>, %arg2: memref<32x16xbf16, #tpu.memory_space<vmem>>, %arg3: memref<1x16xf32, #tpu.memory_space<vmem>>, %arg4: memref<8x16xf32, #tpu.memory_space<vmem>>) attributes {dimension_semantics = [#tpu.dimension_semantics<parallel>], iteration_bounds = array<i64: 1>, scalar_prefetch = 0 : i64, scratch_operands = 0 : i64, tpu.core_type = #tpu.core_type<tc>, window_params = [{transform_indices = @transform_0, window_bounds = array<i64: 8, 32>}, {pipeline_mode = #tpu.pipeline_mode<synchronous>, transform_indices = @transform_1, window_bounds = array<i64: 32, 16>}, {pipeline_mode = #tpu.pipeline_mode<synchronous>, transform_indices = @transform_2, window_bounds = array<i64: 1, 16>}, {transform_indices = @transform_3, window_bounds = array<i64: 8, 16>}]} {
    %c0 = arith.constant 0 : index
    %c0_0 = arith.constant 0 : index
    %0 = vector.load %arg1[%c0, %c0_0] : memref<8x32xf32, #tpu.memory_space<vmem>>, vector<8x32xf32>
    %1 = arith.truncf %0 : vector<8x32xf32> to vector<8x32xbf16>
    %c0_1 = arith.constant 0 : index
    %c0_2 = arith.constant 0 : index
    %2 = vector.load %arg2[%c0_1, %c0_2] : memref<32x16xbf16, #tpu.memory_space<vmem>>, vector<32x16xbf16>
    %cst = arith.constant dense<0.000000e+00> : vector<8x16xf32>
    %3 = tpu.matmul %1, %2, %cst {dimension_numbers = #tpu.dot_dimension_numbers<[1], [0], [0], [1], [0, 0, 1, 1], [], []>} : vector<8x32xbf16>, vector<32x16xbf16>, vector<8x16xf32> -> vector<8x16xf32>
    %c0_3 = arith.constant 0 : index
    %c0_4 = arith.constant 0 : index
    %4 = vector.load %arg3[%c0_3, %c0_4] : memref<1x16xf32, #tpu.memory_space<vmem>>, vector<1x16xf32>
    %5 = vector.broadcast %4 : vector<1x16xf32> to vector<8x16xf32>
    %6 = arith.addf %3, %5 : vector<8x16xf32>
    %c0_5 = arith.constant 0 : index
    %c0_6 = arith.constant 0 : index
    %7 = vector.load %arg4[%c0_5, %c0_6] : memref<8x16xf32, #tpu.memory_space<vmem>>, vector<8x16xf32>
    tpu.vector_store %arg4[%c0_5, %c0_6], %6 {strides = array<i32>} : memref<8x16xf32, #tpu.memory_space<vmem>>, vector<8x16xf32>,
    return
  }
  func.func @transform_0(%arg0: i32) -> (i32, i32) {
    %c0_i32 = arith.constant 0 : i32
    %c0_i32_0 = arith.constant 0 : i32
    return %arg0, %c0_i32 : i32, i32
  }
  func.func @transform_1(%arg0: i32) -> (i32, i32) {
    %c0_i32 = arith.constant 0 : i32
    %c0_i32_0 = arith.constant 0 : i32
    %c0_i32_1 = arith.constant 0 : i32
    return %c0_i32, %c0_i32_0 : i32, i32
  }
  func.func @transform_2(%arg0: i32) -> (i32, i32) {
    %c0_i32 = arith.constant 0 : i32
    %c0_i32_0 = arith.constant 0 : i32
    %c0_i32_1 = arith.constant 0 : i32
    return %c0_i32, %c0_i32_0 : i32, i32
  }
  func.func @transform_3(%arg0: i32) -> (i32, i32) {
    %c0_i32 = arith.constant 0 : i32
    %c0_i32_0 = arith.constant 0 : i32
    return %arg0, %c0_i32 : i32, i32
  }
}

</mosaic_0001>

<bundles_post_ra>
// kernel: linear_probing_forward.1
= control target key start
LH: loop header
LB: loop body
LE: loop exit
PB: predicated region body
PF: predicated region fallthrough
CT: control target
= control target key end

     0   :  { %v143_v1 = vmov 0.0   ;;  %vm144_vm0 = vmmov 0   ;;  %s181_s0 = inlined_call_operand.vmem [shape: f32[8,32], index: 0, kind: input, shape index: {}]   ;;  %s182_s1 = inlined_call_operand.vmem [shape: bf16[32,16], index: 1, kind: input, shape index: {}]   ;;  %s183_s2 = inlined_call_operand.vmem [shape: f32[1,16], index: 2, kind: input, shape index: {}]   ;;  %s184_s3 = inlined_call_operand.hbm [shape: f32[8,16], index: 3, kind: output, shape index: {}]  }
   0x1   :  { %v119_v0 = vld [vmem:[%s182_s1 + $0x8] sm:$0xff]   ;;  %108 = vmatprep.subr.bf16.mxu0 %v143_v1  ;;  %v120_v2 = vld [vmem:[%s182_s1] sm:$0xff]   ;;  %112 = vmatprep.mubr.msk.bf16.mxu0 %vm144_vm0, %v143_v1 }
   0x2   :  { %109 = vmatpush3.bf16.msra.mxu0 %v119_v0  ;;  %v16_v3 = vld [vmem:[%s181_s0] sm:$0xff] }
   0x3   :  { %8 = vsyncpa [#allocation3], 0  ;;  %110 = vmatprep.subr.bf16.mxu0 %v143_v1  ;;  %v17_v4 = vpack.c.bf16 %v16_v3, %v16_v3  ;;  %vm41_vm1 = vcmask 261120   ;;  %v101_v5 = vld [vmem:[%s183_s2] ss:$0 sm:$0xff]  ;;  %s145_s20 = smov [#allocation2]  }
   0x4   :  { %s93_s21 = sshll.u32 %s145_s20, 4  ;;  %vm85_vm2 = vcmask 130048   ;;  %s94_s21 = int_to_ptr.vmem [resolvable:$true] %s93_s21 }
   0x5   :  { %s121_s0 = scalar_lea.vmem %s94_s21, 128  ;;  %p126_p1 = scmp.lt.s32.totalorder %s94_s21, %s94_s21 }
   0x6   :  { %111 = vmatpush3.bf16.msra.mxu0 %v120_v2  ;;  %p122_p0 = scmp.ne.s32.totalorder %s94_s21, %s121_s0  ;;  %p127_p2 = scmp.lt.s32.totalorder %s121_s0, %s121_s0 }
   0x8   :  { %p128_p3 = por %p127_p2, %p126_p1 }
   0x9   :  { %113 = vmatmul.mubr.msk.bf16.vlgmr.msra.gmra.mxu0 %vm41_vm1, %v17_v4 }
   0xa   :  { %p129_p4 = pnand %p128_p3, %p122_p0 }
  0xc9   :  { %v79_v6 = vpop.f32.mrf.mxu0 }
  0xca   :  { %v80_v7 = vadd.f32 %v101_v5, %v79_v6 }
  0xcb   :  { %v114_v8 = vpop.f32.mrf.mxu0 }
  0xcc   :  { %86 = vst.msk [vmem:[#allocation2] sm:$0xff] %vm85_vm2, %v80_v7 }
  0xcd   :  { %v82_v9 = vpop.f32.mrf.mxu0 }
  0xce   :  { %132 = shalt.err (!%p129_p4)
}
  0xcf   :  { %96 = dma.vmem_to_hbm [thread:$0]  %s94_s21, 128, %s184_s3, [#allocation3]   ;;  %v115_v10 = vpop.f32.mrf.mxu0 }
  0xd0   :  { %141 = dma.done.wait [#allocation3], 128  }
  0xd1   :  { %142 = vsyncadd [#allocation3], 4294967168 }
  0xd2   :  { %100 = vsyncpa [#allocation3], 1 }

</bundles_post_ra>
